<compile_context>
chip_gen: v7x
topology: tpu7x:2x2x1
jax: 0.10.0
libtpu: 0.0.40
codegen_flags: <defaults>
</compile_context>

<pallas_src>
import jax
import jax.numpy as jnp
from jax.experimental import pallas as pl
from jax.experimental.pallas import tpu as pltpu

# Problem constants (fixed by the PyTorch module).
C_IN, C_OUT = 3, 8
H = W = 28
KH = KW = 3
STRIDE = 4
DILATION = 3
OH = (H - DILATION * (KH - 1) - 1) // STRIDE + 1    # 6
OW = (W - DILATION * (KW - 1) - 1) // STRIDE + 1    # 6
K_RAW = KH * KW * C_IN                              # 27
K_PAD = 32                                          # pad K for an aligned MXU operand
ROW_PAD = 8                                         # patch rows per oh block (sublane aligned)
M_PAD = OH * ROW_PAD                                # 48
HB = H // STRIDE                                    # 7
WB = W // STRIDE                                    # 7


def _tap_offsets(k):
    # h = oh*STRIDE + k*DILATION  ->  (block offset in units of STRIDE, remainder)
    t = k * DILATION
    return t // STRIDE, t % STRIDE                   # (0,0), (0,3), (1,2)


def _conv_sigmoid_kernel(x_ref, w_ref, o_ref, patches_ref):
    # x_ref:       (7, 4, 7, 12)  image as (h//4, h%4, w//4, (w%4)*3 + c), VMEM
    # w_ref:       (32, 8)        rows [0,27) = (kh,kw,cin) weights, row 27 = bias, rest 0
    # o_ref:       (8, 48)        sigmoid(conv), transposed: [cout, m = oh*8 + ow]
    # patches_ref: (48, 32)       VMEM scratch for the fused im2col
    x = x_ref[...]                                   # single full load (4-D value)

    # Zero the patch matrix, except column 27 which holds the folded bias' 1.0.
    col = jax.lax.broadcasted_iota(jnp.int32, (M_PAD, K_PAD), 1)
    patches_ref[...] = (col == K_RAW).astype(jnp.float32)

    # Fused im2col: all slices are static & contiguous, 18 scratch stores total.
    for kh in range(KH):
        hb0, hr = _tap_offsets(kh)
        taps = []
        for kw in range(KW):
            wb0, wr = _tap_offsets(kw)
            # (oh, ow, c) tap block for this (kh, kw): contiguous slices only.
            taps.append(x[hb0:hb0 + OH, hr, wb0:wb0 + OW, wr * C_IN:(wr + 1) * C_IN])
        blk = jnp.concatenate(taps, axis=-1)         # (6, 6, 9) = [oh, ow, kw*3+c]
        for oh in range(OH):
            patches_ref[pl.ds(oh * ROW_PAD, OW),
                        pl.ds(kh * KW * C_IN, KW * C_IN)] = blk[oh]

    # Single MXU matmul with f32 accumulation; bias arrives via column 27.
    acc = jnp.dot(patches_ref[...], w_ref[...],
                  preferred_element_type=jnp.float32)            # (48, 8)
    # Sigmoid epilogue (exp on the EUP); store the transposed, lane-dense result.
    o_ref[...] = (1.0 / (1.0 + jnp.exp(-acc))).T                 # (8, 48)


_CONV_CALL = pl.pallas_call(
    _conv_sigmoid_kernel,
    out_shape=jax.ShapeDtypeStruct((C_OUT, M_PAD), jnp.float32),
    in_specs=[pl.BlockSpec(memory_space=pltpu.MemorySpace.VMEM),
              pl.BlockSpec(memory_space=pltpu.MemorySpace.VMEM)],
    out_specs=pl.BlockSpec(memory_space=pltpu.MemorySpace.VMEM),
    scratch_shapes=[pltpu.VMEM((M_PAD, K_PAD), jnp.float32)],
    cost_estimate=pl.CostEstimate(
        flops=2 * OH * OW * K_RAW * C_OUT,
        transcendentals=OH * OW * C_OUT,
        bytes_accessed=4 * (H * W * C_IN + K_PAD * C_OUT + C_OUT * M_PAD)),
)


def fold_params(weight, bias):
    """One-time parameter prep (hoisted out of the per-call path).

    weight: (8, 3, 3, 3) OIHW, bias: (8,).  Returns (32, 8): rows 0-26 are the
    (kh, kw, cin)-flattened weights, row 27 is the bias, rows 28-31 are zero.
    """
    w = jnp.transpose(weight, (2, 3, 1, 0)).reshape(K_RAW, C_OUT).astype(jnp.float32)
    return jnp.concatenate(
        [w, bias.reshape(1, C_OUT).astype(jnp.float32),
         jnp.zeros((K_PAD - K_RAW - 1, C_OUT), jnp.float32)], axis=0)      # (32, 8)


def conv2d_sigmoid(x_nchw, w_folded):
    """Forward pass of the PyTorch module. x_nchw: (1,3,28,28) f32 -> (1,8,6,6)."""
    # TODO(synk): if batch > 1 is ever needed, add a leading "parallel" batch grid
    # axis (shards across v7x's two TensorCores) instead of calling per image.
    x5 = jnp.transpose(x_nchw[0], (1, 2, 0)).reshape(HB, STRIDE, WB, STRIDE * C_IN)
    out = _CONV_CALL(x5.astype(jnp.float32), w_folded)                     # (8, 48)
    # Undo the ow row padding; already channel-major, so no transpose needed.
    return out.reshape(C_OUT, OH, ROW_PAD)[:, :, :OW][None]                # (1, 8, 6, 6)


if __name__ == "__main__":
    key = jax.random.PRNGKey(0)
    kx, kw_, kb = jax.random.split(key, 3)
    x = jax.random.normal(kx, (1, C_IN, H, W), jnp.float32)
    w = jax.random.normal(kw_, (C_OUT, C_IN, KH, KW), jnp.float32) * 0.2
    b = jax.random.normal(kb, (C_OUT,), jnp.float32) * 0.1

    w_folded = fold_params(w, b)                     # one-time parameter prep
    fwd = jax.jit(conv2d_sigmoid)
    y = jax.block_until_ready(fwd(x, w_folded))

    # Pure-JAX reference (same semantics as the PyTorch module).
    ref = jax.lax.conv_general_dilated(
        x, w, window_strides=(STRIDE, STRIDE), padding="VALID",
        rhs_dilation=(DILATION, DILATION),
        dimension_numbers=("NCHW", "OIHW", "NCHW"),
        precision=jax.lax.Precision.HIGHEST)
    ref = jax.nn.sigmoid(ref + b.reshape(1, C_OUT, 1, 1))

    assert y.shape == (1, C_OUT, OH, OW)
    assert float(jnp.max(jnp.abs(y - ref))) < 2e-2

    print("KERNEL_OK")
</pallas_src>

<mosaic_0001>
module attributes {stable_mosaic.version = 11 : i64} {
  func.func @_conv_sigmoid_kernel(%arg0: memref<7x4x7x12xf32, #tpu.memory_space<vmem>>, %arg1: memref<32x8xf32, #tpu.memory_space<vmem>>, %arg2: memref<8x48xf32, #tpu.memory_space<vmem>>, %arg3: memref<48x32xf32, #tpu.memory_space<vmem>>) attributes {dimension_semantics = [], scalar_prefetch = 0 : i64, scratch_operands = 1 : i64, tpu.core_type = #tpu.core_type<tc>} {
    %c0 = arith.constant 0 : index
    %c0_0 = arith.constant 0 : index
    %c0_1 = arith.constant 0 : index
    %c0_2 = arith.constant 0 : index
    %0 = vector.load %arg0[%c0, %c0_0, %c0_1, %c0_2] : memref<7x4x7x12xf32, #tpu.memory_space<vmem>>, vector<7x4x7x12xf32>
    %1 = tpu.iota {dimensions = array<i32: 1>} : vector<48x32xi32>
    %c27_i32 = arith.constant 27 : i32
    %2 = vector.broadcast %c27_i32 : i32 to vector<48x32xi32>
    %3 = arith.cmpi eq, %1, %2 : vector<48x32xi32>
    %4 = arith.extui %3 : vector<48x32xi1> to vector<48x32xi32>
    %5 = arith.sitofp %4 : vector<48x32xi32> to vector<48x32xf32>
    %c0_3 = arith.constant 0 : index
    %c0_4 = arith.constant 0 : index
    %6 = vector.load %arg3[%c0_3, %c0_4] : memref<48x32xf32, #tpu.memory_space<vmem>>, vector<48x32xf32>
    tpu.vector_store %arg3[%c0_3, %c0_4], %5 {strides = array<i32>} : memref<48x32xf32, #tpu.memory_space<vmem>>, vector<48x32xf32>,
    %7 = vector.extract_strided_slice %0 {offsets = [0, 0, 0, 0], sizes = [6, 1, 6, 3], strides = [1, 1, 1, 1]} : vector<7x4x7x12xf32> to vector<6x1x6x3xf32>
    %8 = vector.shape_cast %7 : vector<6x1x6x3xf32> to vector<6x6x3xf32>
    %9 = vector.extract_strided_slice %0 {offsets = [0, 0, 0, 9], sizes = [6, 1, 6, 3], strides = [1, 1, 1, 1]} : vector<7x4x7x12xf32> to vector<6x1x6x3xf32>
    %10 = vector.shape_cast %9 : vector<6x1x6x3xf32> to vector<6x6x3xf32>
    %11 = vector.extract_strided_slice %0 {offsets = [0, 0, 1, 6], sizes = [6, 1, 6, 3], strides = [1, 1, 1, 1]} : vector<7x4x7x12xf32> to vector<6x1x6x3xf32>
    %12 = vector.shape_cast %11 : vector<6x1x6x3xf32> to vector<6x6x3xf32>
    %13 = tpu.concatenate %8, %10, %12 in 2 : vector<6x6x3xf32>, vector<6x6x3xf32>, vector<6x6x3xf32> -> vector<6x6x9xf32>
    %14 = vector.extract_strided_slice %13 {offsets = [0, 0, 0], sizes = [1, 6, 9], strides = [1, 1, 1]} : vector<6x6x9xf32> to vector<1x6x9xf32>
    %15 = vector.shape_cast %14 : vector<1x6x9xf32> to vector<6x9xf32>
    %c0_5 = arith.constant 0 : index
    %c0_6 = arith.constant 0 : index
    %16 = vector.load %arg3[%c0_5, %c0_6] : memref<48x32xf32, #tpu.memory_space<vmem>>, vector<6x9xf32>
    tpu.vector_store %arg3[%c0_5, %c0_6], %15 {strides = array<i32>} : memref<48x32xf32, #tpu.memory_space<vmem>>, vector<6x9xf32>,
    %17 = vector.extract_strided_slice %13 {offsets = [1, 0, 0], sizes = [1, 6, 9], strides = [1, 1, 1]} : vector<6x6x9xf32> to vector<1x6x9xf32>
    %18 = vector.shape_cast %17 : vector<1x6x9xf32> to vector<6x9xf32>
    %c8 = arith.constant 8 : index
    %c0_7 = arith.constant 0 : index
    %19 = vector.load %arg3[%c8, %c0_7] : memref<48x32xf32, #tpu.memory_space<vmem>>, vector<6x9xf32>
    tpu.vector_store %arg3[%c8, %c0_7], %18 {strides = array<i32>} : memref<48x32xf32, #tpu.memory_space<vmem>>, vector<6x9xf32>,
    %20 = vector.extract_strided_slice %13 {offsets = [2, 0, 0], sizes = [1, 6, 9], strides = [1, 1, 1]} : vector<6x6x9xf32> to vector<1x6x9xf32>
    %21 = vector.shape_cast %20 : vector<1x6x9xf32> to vector<6x9xf32>
    %c16 = arith.constant 16 : index
    %c0_8 = arith.constant 0 : index
    %22 = vector.load %arg3[%c16, %c0_8] : memref<48x32xf32, #tpu.memory_space<vmem>>, vector<6x9xf32>
    tpu.vector_store %arg3[%c16, %c0_8], %21 {strides = array<i32>} : memref<48x32xf32, #tpu.memory_space<vmem>>, vector<6x9xf32>,
    %23 = vector.extract_strided_slice %13 {offsets = [3, 0, 0], sizes = [1, 6, 9], strides = [1, 1, 1]} : vector<6x6x9xf32> to vector<1x6x9xf32>
    %24 = vector.shape_cast %23 : vector<1x6x9xf32> to vector<6x9xf32>
    %c24 = arith.constant 24 : index
    %c0_9 = arith.constant 0 : index
    %25 = vector.load %arg3[%c24, %c0_9] : memref<48x32xf32, #tpu.memory_space<vmem>>, vector<6x9xf32>
    tpu.vector_store %arg3[%c24, %c0_9], %24 {strides = array<i32>} : memref<48x32xf32, #tpu.memory_space<vmem>>, vector<6x9xf32>,
    %26 = vector.extract_strided_slice %13 {offsets = [4, 0, 0], sizes = [1, 6, 9], strides = [1, 1, 1]} : vector<6x6x9xf32> to vector<1x6x9xf32>
    %27 = vector.shape_cast %26 : vector<1x6x9xf32> to vector<6x9xf32>
    %c32 = arith.constant 32 : index
    %c0_10 = arith.constant 0 : index
    %28 = vector.load %arg3[%c32, %c0_10] : memref<48x32xf32, #tpu.memory_space<vmem>>, vector<6x9xf32>
    tpu.vector_store %arg3[%c32, %c0_10], %27 {strides = array<i32>} : memref<48x32xf32, #tpu.memory_space<vmem>>, vector<6x9xf32>,
    %29 = vector.extract_strided_slice %13 {offsets = [5, 0, 0], sizes = [1, 6, 9], strides = [1, 1, 1]} : vector<6x6x9xf32> to vector<1x6x9xf32>
    %30 = vector.shape_cast %29 : vector<1x6x9xf32> to vector<6x9xf32>
    %c40 = arith.constant 40 : index
    %c0_11 = arith.constant 0 : index
    %31 = vector.load %arg3[%c40, %c0_11] : memref<48x32xf32, #tpu.memory_space<vmem>>, vector<6x9xf32>
    tpu.vector_store %arg3[%c40, %c0_11], %30 {strides = array<i32>} : memref<48x32xf32, #tpu.memory_space<vmem>>, vector<6x9xf32>,
    %32 = vector.extract_strided_slice %0 {offsets = [0, 3, 0, 0], sizes = [6, 1, 6, 3], strides = [1, 1, 1, 1]} : vector<7x4x7x12xf32> to vector<6x1x6x3xf32>
    %33 = vector.shape_cast %32 : vector<6x1x6x3xf32> to vector<6x6x3xf32>
    %34 = vector.extract_strided_slice %0 {offsets = [0, 3, 0, 9], sizes = [6, 1, 6, 3], strides = [1, 1, 1, 1]} : vector<7x4x7x12xf32> to vector<6x1x6x3xf32>
    %35 = vector.shape_cast %34 : vector<6x1x6x3xf32> to vector<6x6x3xf32>
    %36 = vector.extract_strided_slice %0 {offsets = [0, 3, 1, 6], sizes = [6, 1, 6, 3], strides = [1, 1, 1, 1]} : vector<7x4x7x12xf32> to vector<6x1x6x3xf32>
    %37 = vector.shape_cast %36 : vector<6x1x6x3xf32> to vector<6x6x3xf32>
    %38 = tpu.concatenate %33, %35, %37 in 2 : vector<6x6x3xf32>, vector<6x6x3xf32>, vector<6x6x3xf32> -> vector<6x6x9xf32>
    %39 = vector.extract_strided_slice %38 {offsets = [0, 0, 0], sizes = [1, 6, 9], strides = [1, 1, 1]} : vector<6x6x9xf32> to vector<1x6x9xf32>
    %40 = vector.shape_cast %39 : vector<1x6x9xf32> to vector<6x9xf32>
    %c0_12 = arith.constant 0 : index
    %c9 = arith.constant 9 : index
    %41 = vector.load %arg3[%c0_12, %c9] : memref<48x32xf32, #tpu.memory_space<vmem>>, vector<6x9xf32>
    tpu.vector_store %arg3[%c0_12, %c9], %40 {strides = array<i32>} : memref<48x32xf32, #tpu.memory_space<vmem>>, vector<6x9xf32>,
    %42 = vector.extract_strided_slice %38 {offsets = [1, 0, 0], sizes = [1, 6, 9], strides = [1, 1, 1]} : vector<6x6x9xf32> to vector<1x6x9xf32>
    %43 = vector.shape_cast %42 : vector<1x6x9xf32> to vector<6x9xf32>
    %c8_13 = arith.constant 8 : index
    %c9_14 = arith.constant 9 : index
    %44 = vector.load %arg3[%c8_13, %c9_14] : memref<48x32xf32, #tpu.memory_space<vmem>>, vector<6x9xf32>
    tpu.vector_store %arg3[%c8_13, %c9_14], %43 {strides = array<i32>} : memref<48x32xf32, #tpu.memory_space<vmem>>, vector<6x9xf32>,
    %45 = vector.extract_strided_slice %38 {offsets = [2, 0, 0], sizes = [1, 6, 9], strides = [1, 1, 1]} : vector<6x6x9xf32> to vector<1x6x9xf32>
    %46 = vector.shape_cast %45 : vector<1x6x9xf32> to vector<6x9xf32>
    %c16_15 = arith.constant 16 : index
    %c9_16 = arith.constant 9 : index
    %47 = vector.load %arg3[%c16_15, %c9_16] : memref<48x32xf32, #tpu.memory_space<vmem>>, vector<6x9xf32>
    tpu.vector_store %arg3[%c16_15, %c9_16], %46 {strides = array<i32>} : memref<48x32xf32, #tpu.memory_space<vmem>>, vector<6x9xf32>,
    %48 = vector.extract_strided_slice %38 {offsets = [3, 0, 0], sizes = [1, 6, 9], strides = [1, 1, 1]} : vector<6x6x9xf32> to vector<1x6x9xf32>
    %49 = vector.shape_cast %48 : vector<1x6x9xf32> to vector<6x9xf32>
    %c24_17 = arith.constant 24 : index
    %c9_18 = arith.constant 9 : index
    %50 = vector.load %arg3[%c24_17, %c9_18] : memref<48x32xf32, #tpu.memory_space<vmem>>, vector<6x9xf32>
    tpu.vector_store %arg3[%c24_17, %c9_18], %49 {strides = array<i32>} : memref<48x32xf32, #tpu.memory_space<vmem>>, vector<6x9xf32>,
    %51 = vector.extract_strided_slice %38 {offsets = [4, 0, 0], sizes = [1, 6, 9], strides = [1, 1, 1]} : vector<6x6x9xf32> to vector<1x6x9xf32>
    %52 = vector.shape_cast %51 : vector<1x6x9xf32> to vector<6x9xf32>
    %c32_19 = arith.constant 32 : index
    %c9_20 = arith.constant 9 : index
    %53 = vector.load %arg3[%c32_19, %c9_20] : memref<48x32xf32, #tpu.memory_space<vmem>>, vector<6x9xf32>
    tpu.vector_store %arg3[%c32_19, %c9_20], %52 {strides = array<i32>} : memref<48x32xf32, #tpu.memory_space<vmem>>, vector<6x9xf32>,
    %54 = vector.extract_strided_slice %38 {offsets = [5, 0, 0], sizes = [1, 6, 9], strides = [1, 1, 1]} : vector<6x6x9xf32> to vector<1x6x9xf32>
    %55 = vector.shape_cast %54 : vector<1x6x9xf32> to vector<6x9xf32>
    %c40_21 = arith.constant 40 : index
    %c9_22 = arith.constant 9 : index
    %56 = vector.load %arg3[%c40_21, %c9_22] : memref<48x32xf32, #tpu.memory_space<vmem>>, vector<6x9xf32>
    tpu.vector_store %arg3[%c40_21, %c9_22], %55 {strides = array<i32>} : memref<48x32xf32, #tpu.memory_space<vmem>>, vector<6x9xf32>,
    %57 = vector.extract_strided_slice %0 {offsets = [1, 2, 0, 0], sizes = [6, 1, 6, 3], strides = [1, 1, 1, 1]} : vector<7x4x7x12xf32> to vector<6x1x6x3xf32>
    %58 = vector.shape_cast %57 : vector<6x1x6x3xf32> to vector<6x6x3xf32>
    %59 = vector.extract_strided_slice %0 {offsets = [1, 2, 0, 9], sizes = [6, 1, 6, 3], strides = [1, 1, 1, 1]} : vector<7x4x7x12xf32> to vector<6x1x6x3xf32>
    %60 = vector.shape_cast %59 : vector<6x1x6x3xf32> to vector<6x6x3xf32>
    %61 = vector.extract_strided_slice %0 {offsets = [1, 2, 1, 6], sizes = [6, 1, 6, 3], strides = [1, 1, 1, 1]} : vector<7x4x7x12xf32> to vector<6x1x6x3xf32>
    %62 = vector.shape_cast %61 : vector<6x1x6x3xf32> to vector<6x6x3xf32>
    %63 = tpu.concatenate %58, %60, %62 in 2 : vector<6x6x3xf32>, vector<6x6x3xf32>, vector<6x6x3xf32> -> vector<6x6x9xf32>
    %64 = vector.extract_strided_slice %63 {offsets = [0, 0, 0], sizes = [1, 6, 9], strides = [1, 1, 1]} : vector<6x6x9xf32> to vector<1x6x9xf32>
    %65 = vector.shape_cast %64 : vector<1x6x9xf32> to vector<6x9xf32>
    %c0_23 = arith.constant 0 : index
    %c18 = arith.constant 18 : index
    %66 = vector.load %arg3[%c0_23, %c18] : memref<48x32xf32, #tpu.memory_space<vmem>>, vector<6x9xf32>
    tpu.vector_store %arg3[%c0_23, %c18], %65 {strides = array<i32>} : memref<48x32xf32, #tpu.memory_space<vmem>>, vector<6x9xf32>,
    %67 = vector.extract_strided_slice %63 {offsets = [1, 0, 0], sizes = [1, 6, 9], strides = [1, 1, 1]} : vector<6x6x9xf32> to vector<1x6x9xf32>
    %68 = vector.shape_cast %67 : vector<1x6x9xf32> to vector<6x9xf32>
    %c8_24 = arith.constant 8 : index
    %c18_25 = arith.constant 18 : index
    %69 = vector.load %arg3[%c8_24, %c18_25] : memref<48x32xf32, #tpu.memory_space<vmem>>, vector<6x9xf32>
    tpu.vector_store %arg3[%c8_24, %c18_25], %68 {strides = array<i32>} : memref<48x32xf32, #tpu.memory_space<vmem>>, vector<6x9xf32>,
    %70 = vector.extract_strided_slice %63 {offsets = [2, 0, 0], sizes = [1, 6, 9], strides = [1, 1, 1]} : vector<6x6x9xf32> to vector<1x6x9xf32>
    %71 = vector.shape_cast %70 : vector<1x6x9xf32> to vector<6x9xf32>
    %c16_26 = arith.constant 16 : index
    %c18_27 = arith.constant 18 : index
    %72 = vector.load %arg3[%c16_26, %c18_27] : memref<48x32xf32, #tpu.memory_space<vmem>>, vector<6x9xf32>
    tpu.vector_store %arg3[%c16_26, %c18_27], %71 {strides = array<i32>} : memref<48x32xf32, #tpu.memory_space<vmem>>, vector<6x9xf32>,
    %73 = vector.extract_strided_slice %63 {offsets = [3, 0, 0], sizes = [1, 6, 9], strides = [1, 1, 1]} : vector<6x6x9xf32> to vector<1x6x9xf32>
    %74 = vector.shape_cast %73 : vector<1x6x9xf32> to vector<6x9xf32>
    %c24_28 = arith.constant 24 : index
    %c18_29 = arith.constant 18 : index
    %75 = vector.load %arg3[%c24_28, %c18_29] : memref<48x32xf32, #tpu.memory_space<vmem>>, vector<6x9xf32>
    tpu.vector_store %arg3[%c24_28, %c18_29], %74 {strides = array<i32>} : memref<48x32xf32, #tpu.memory_space<vmem>>, vector<6x9xf32>,
    %76 = vector.extract_strided_slice %63 {offsets = [4, 0, 0], sizes = [1, 6, 9], strides = [1, 1, 1]} : vector<6x6x9xf32> to vector<1x6x9xf32>
    %77 = vector.shape_cast %76 : vector<1x6x9xf32> to vector<6x9xf32>
    %c32_30 = arith.constant 32 : index
    %c18_31 = arith.constant 18 : index
    %78 = vector.load %arg3[%c32_30, %c18_31] : memref<48x32xf32, #tpu.memory_space<vmem>>, vector<6x9xf32>
    tpu.vector_store %arg3[%c32_30, %c18_31], %77 {strides = array<i32>} : memref<48x32xf32, #tpu.memory_space<vmem>>, vector<6x9xf32>,
    %79 = vector.extract_strided_slice %63 {offsets = [5, 0, 0], sizes = [1, 6, 9], strides = [1, 1, 1]} : vector<6x6x9xf32> to vector<1x6x9xf32>
    %80 = vector.shape_cast %79 : vector<1x6x9xf32> to vector<6x9xf32>
    %c40_32 = arith.constant 40 : index
    %c18_33 = arith.constant 18 : index
    %81 = vector.load %arg3[%c40_32, %c18_33] : memref<48x32xf32, #tpu.memory_space<vmem>>, vector<6x9xf32>
    tpu.vector_store %arg3[%c40_32, %c18_33], %80 {strides = array<i32>} : memref<48x32xf32, #tpu.memory_space<vmem>>, vector<6x9xf32>,
    %c0_34 = arith.constant 0 : index
    %c0_35 = arith.constant 0 : index
    %82 = vector.load %arg3[%c0_34, %c0_35] : memref<48x32xf32, #tpu.memory_space<vmem>>, vector<48x32xf32>
    %c0_36 = arith.constant 0 : index
    %c0_37 = arith.constant 0 : index
    %83 = vector.load %arg1[%c0_36, %c0_37] : memref<32x8xf32, #tpu.memory_space<vmem>>, vector<32x8xf32>
    %cst = arith.constant dense<0.000000e+00> : vector<48x8xf32>
    %84 = tpu.matmul %82, %83, %cst {dimension_numbers = #tpu.dot_dimension_numbers<[1], [0], [0], [1], [0, 0, 1, 1], [], []>} : vector<48x32xf32>, vector<32x8xf32>, vector<48x8xf32> -> vector<48x8xf32>
    %cst_38 = arith.constant 0.000000e+00 : f32
    %85 = vector.broadcast %cst_38 : f32 to vector<48x8xf32>
    %86 = arith.subf %85, %84 : vector<48x8xf32>
    %87 = math.exp %86 : vector<48x8xf32>
    %cst_39 = arith.constant 1.000000e+00 : f32
    %88 = vector.broadcast %cst_39 : f32 to vector<48x8xf32>
    %89 = arith.addf %88, %87 : vector<48x8xf32>
    %cst_40 = arith.constant 1.000000e+00 : f32
    %90 = vector.broadcast %cst_40 : f32 to vector<48x8xf32>
    %91 = arith.divf %90, %89 : vector<48x8xf32>
    %92 = tpu.transpose %91, [1, 0] : vector<48x8xf32> -> vector<8x48xf32>
    %c0_41 = arith.constant 0 : index
    %c0_42 = arith.constant 0 : index
    %93 = vector.load %arg2[%c0_41, %c0_42] : memref<8x48xf32, #tpu.memory_space<vmem>>, vector<8x48xf32>
    tpu.vector_store %arg2[%c0_41, %c0_42], %92 {strides = array<i32>} : memref<8x48xf32, #tpu.memory_space<vmem>>, vector<8x48xf32>,
    return
  }
}

</mosaic_0001>

<bundles_post_ra>
// kernel: conv2d_sigmoid.1
= control target key start
LH: loop header
LB: loop body
LE: loop exit
PB: predicated region body
PF: predicated region fallthrough
CT: control target
= control target key end

     0   :  { %s527_s13 = smov 122   ;;  %v29_v12 = vlaneseq  ;;  %vm34_vm0 = vcmask 261120   ;;  %v528_v18 = vmov 0.0   ;;  %vm77_vm2 = vcmask 23552   ;;  %s801_s0 = inlined_call_operand.vmem [shape: f32[7,4,7,12], index: 0, kind: input, shape index: {}]   ;;  %s802_s1 = inlined_call_operand.vmem [shape: f32[32,8], index: 1, kind: input, shape index: {}]   ;;  %s803_s2 = inlined_call_operand.vmem [shape: f32[8,48], index: 2, kind: output, shape index: {}]  }
   0x1   :  { %v549_v0 = vld [vmem:[%s801_s0 + $0x18] sm:$0x7f]  ;;  %v554_v1 = vld [vmem:[%s801_s0 + $0x30] sm:$0x7f]  ;;  %v633_v13 = vld [vmem:[%s801_s0] sm:$0x7f] }
   0x2   :  { %104 = vrot.lane.b32.xlu0 %v549_v0, %s527_s13  ;;  %183 = vrot.lane.b32.xlu1 %v554_v1, %s527_s13  ;;  %v563_v2 = vld [vmem:[%s801_s0 + $0x38] sm:$0x7f]  ;;  %v568_v3 = vld [vmem:[%s801_s0 + $0x50] sm:$0x7f]  ;;  %v30_v15 = vand.u32 127, %v29_v12  ;;  %v122_v28 = vrot.slane %v549_v0, 1 }
   0x3   :  { %v577_v4 = vld [vmem:[%s801_s0 + $0x58] sm:$0x7f]  ;;  %v591_v6 = vld [vmem:[%s801_s0 + $0x70] sm:$0x7f]  ;;  %v638_v14 = vld [vmem:[%s801_s0 + $0x20] sm:$0x7f] }
   0x4   :  { %v582_v5 = vld [vmem:[%s801_s0 + $0x78] sm:$0x7f]  ;;  %v596_v7 = vld [vmem:[%s801_s0 + $0x90] sm:$0x7f]  ;;  %vm31_vm1 = vcmp.eq.s32.totalorder %v30_v15, 27  ;;  %v262_v22 = vld [vmem:[%s802_s1] sm:$0xff] }
   0x5   :  { %v605_v8 = vld [vmem:[%s801_s0 + $0x98] sm:$0x7f]  ;;  %v619_v10 = vld [vmem:[%s801_s0 + $0xb0] sm:$0x7f]  ;;  %v647_v16 = vld [vmem:[%s801_s0 + $0x60] sm:$0x7f] }
   0x6   :  { %106 = vrot.lane.b32.xlu0 %v563_v2, %s527_s13  ;;  %185 = vrot.lane.b32.xlu1 %v568_v3, %s527_s13  ;;  %v610_v9 = vld [vmem:[%s801_s0 + $0xb8] sm:$0x7f]  ;;  %v624_v11 = vld [vmem:[%s801_s0 + $0xd0] sm:$0x7f]  ;;  %v453_v19 = vsel %vm31_vm1, 1.0, %v528_v18  ;;  %v201_v29 = vrot.slane %v554_v1, 1 }
   0x7   :  { %v652_v17 = vld [vmem:[%s801_s0 + $0x40] sm:$0x7f]  ;;  %35 = vst.msk [vmem:[#allocation2] sm:$0xff] %vm34_vm0, %v453_v19  ;;  %36 = vst.msk [vmem:[#allocation2 + $0x8] sm:$0xff] %vm34_vm0, %v453_v19  ;;  %v263_v23 = vld [vmem:[%s802_s1 + $0x8] sm:$0xff]  ;;  %vm84_vm3 = vcmask 48128  }
   0x8   :  { %37 = vst.msk [vmem:[#allocation2 + $0x10] sm:$0xff] %vm34_vm0, %v453_v19  ;;  %38 = vst.msk [vmem:[#allocation2 + $0x18] sm:$0xff] %vm34_vm0, %v453_v19  ;;  %v667_v20 = vld [vmem:[%s801_s0 + $0xa0] sm:$0x7f]  ;;  %v487_v24 = vpack.c.bf16 %v263_v23, %v262_v22  ;;  %v264_v25 = vld [vmem:[%s802_s1 + $0x10] sm:$0xff]  ;;  %v123_v34 = vrot.slane %v563_v2, 1 }
   0x9   :  { %39 = vst.msk [vmem:[#allocation2 + $0x20] sm:$0xff] %vm34_vm0, %v453_v19  ;;  %40 = vst.msk [vmem:[#allocation2 + $0x28] sm:$0xff] %vm34_vm0, %v453_v19  ;;  %v672_v21 = vld [vmem:[%s801_s0 + $0x80] sm:$0x7f]  ;;  %v265_v26 = vld [vmem:[%s802_s1 + $0x18] sm:$0xff]  ;;  %v202_v35 = vrot.slane %v568_v3, 1 }
   0xa   :  { %108 = vrot.lane.b32.xlu0 %v577_v4, %s527_s13  ;;  %110 = vrot.lane.b32.xlu1 %v582_v5, %s527_s13  ;;  %v491_v27 = vpack.c.bf16 %v265_v26, %v264_v25  ;;  %s529_s1 = smov 9   ;;  %v124_v42 = vrot.slane %v577_v4, 1  ;;  %v125_v45 = vrot.slane %v582_v5, 1  ;;  %v203_v50 = vrot.slane %v591_v6, 1 }
   0xb   :  { %488 = vmatprep.subr.bf16.mxu0 %v487_v24  ;;  %495 = vmatprep.subr.bf16.mxu1 %v487_v24  ;;  %v204_v52 = vrot.slane %v596_v7, 1  ;;  %v126_v58 = vrot.slane %v605_v8, 1  ;;  %v127_v60 = vrot.slane %v610_v9, 1  ;;  %v65_v12 = vrot.slane %v633_v13, 1 }
   0xc   :  { %490 = vmatpush3.bf16.msra.mxu0 %v487_v24  ;;  %497 = vmatpush3.bf16.msra.mxu1 %v487_v24  ;;  %v66_v15 = vrot.slane %v638_v14, 1  ;;  %vm91_vm4 = vcmask 70656   ;;  %v68_v24 = vrot.slane %v647_v16, 1  ;;  %v67_v25 = vrot.slane %v652_v17, 1 }
   0xd   :  { %492 = vmatprep.subr.bf16.mxu0 %v491_v27  ;;  %496 = vmatprep.subr.bf16.mxu1 %v491_v27  ;;  %vm150_vm5 = vcmask 144456   ;;  %vm229_vm6 = vcmask 218256   ;;  %vm447_vm7 = vcmask 392192  }
   0xe   :  { %187 = vrot.lane.b32.xlu0 %v591_v6, %s527_s13  ;;  %189 = vrot.lane.b32.xlu1 %v596_v7, %s527_s13 }
  0x10   :  { %494 = vmatpush3.bf16.msra.mxu0 %v491_v27  ;;  %498 = vmatpush3.bf16.msra.mxu1 %v491_v27 }
  0x12   :  { %112 = vrot.lane.b32.xlu0 %v605_v8, %s527_s13  ;;  %114 = vrot.lane.b32.xlu1 %v610_v9, %s527_s13 }
  0x16   :  { %191 = vrot.lane.b32.xlu0 %v619_v10, %s527_s13  ;;  %193 = vrot.lane.b32.xlu1 %v624_v11, %s527_s13 }
  0x1a   :  { %47 = vrot.lane.b32.xlu0 %v633_v13, %s527_s13  ;;  %49 = vrot.lane.b32.xlu1 %v638_v14, %s527_s13 }
  0x1e   :  { %53 = vrot.lane.b32.xlu0 %v647_v16, %s527_s13  ;;  %51 = vrot.lane.b32.xlu1 %v652_v17, %s527_s13 }
  0x22   :  { %57 = vrot.lane.b32.xlu0 %v667_v20, %s527_s13  ;;  %55 = vrot.lane.b32.xlu1 %v672_v21, %s527_s13  ;;  %s530_s13 = smov 18  }
  0x74   :  { %v105_v30 = vpop.permute.xlu0 %104  ;;  %v184_v31 = vpop.permute.xlu1 %183 }
  0x75   :  { %v134_v32 = vsel %vm77_vm2, %v549_v0, %v105_v30  ;;  %v213_v33 = vsel %vm77_vm2, %v554_v1, %v184_v31  ;;  %v70_v30 = vrot.slane %v667_v20, 1  ;;  %v69_v31 = vrot.slane %v672_v21, 1 }
  0x76   :  { %v140_v36 = vsel %vm84_vm3, %v134_v32, %v122_v28  ;;  %v219_v37 = vsel %vm84_vm3, %v213_v33, %v201_v29 }
  0x77   :  { %147 = vrot.lane.b32.xlu0 %v140_v36, %s529_s1  ;;  %226 = vrot.lane.b32.xlu1 %v219_v37, %s530_s13 }
  0x78   :  { %v107_v38 = vpop.permute.xlu0 %106  ;;  %v186_v39 = vpop.permute.xlu1 %185 }
  0x79   :  { %v135_v40 = vsel %vm77_vm2, %v563_v2, %v107_v38  ;;  %v214_v41 = vsel %vm77_vm2, %v568_v3, %v186_v39  ;;  %v205_v2 = vrot.slane %v619_v10, 1 }
  0x7a   :  { %v141_v43 = vsel %vm84_vm3, %v135_v40, %v123_v34  ;;  %v220_v44 = vsel %vm84_vm3, %v214_v41, %v202_v35 }
  0x7b   :  { %153 = vrot.lane.b32.xlu0 %v141_v43, %s529_s1  ;;  %232 = vrot.lane.b32.xlu1 %v220_v44, %s530_s13 }
  0x7c   :  { %v109_v46 = vpop.permute.xlu0 %108  ;;  %v111_v47 = vpop.permute.xlu1 %110 }
  0x7d   :  { %v136_v48 = vsel %vm77_vm2, %v577_v4, %v109_v46  ;;  %v137_v49 = vsel %vm77_vm2, %v582_v5, %v111_v47  ;;  %v206_v4 = vrot.slane %v624_v11, 1 }
  0x7e   :  { %v142_v51 = vsel %vm84_vm3, %v136_v48, %v124_v42  ;;  %v143_v54 = vsel %vm84_vm3, %v137_v49, %v125_v45 }
  0x7f   :  { %158 = vrot.lane.b32.xlu0 %v142_v51, %s529_s1 }
  0x80   :  { %v188_v53 = vpop.permute.xlu0 %187  ;;  %v190_v55 = vpop.permute.xlu1 %189 }
  0x81   :  { %v215_v56 = vsel %vm77_vm2, %v591_v6, %v188_v53  ;;  %v216_v57 = vsel %vm77_vm2, %v596_v7, %v190_v55 }
  0x82   :  { %v221_v59 = vsel %vm84_vm3, %v215_v56, %v203_v50  ;;  %v222_v61 = vsel %vm84_vm3, %v216_v57, %v204_v52 }
  0x83   :  { %237 = vrot.lane.b32.xlu1 %v221_v59, %s530_s13  ;;  %163 = vrot.lane.b32.xlu0 %v143_v54, %s529_s1 }
  0x84   :  { %v113_v62 = vpop.permute.xlu0 %112  ;;  %v115_v63 = vpop.permute.xlu1 %114 }
  0x85   :  { %v138_v0 = vsel %vm77_vm2, %v605_v8, %v113_v62  ;;  %v139_v1 = vsel %vm77_vm2, %v610_v9, %v115_v63 }
  0x86   :  { %v144_v3 = vsel %vm84_vm3, %v138_v0, %v126_v58  ;;  %v145_v5 = vsel %vm84_vm3, %v139_v1, %v127_v60 }
  0x87   :  { %242 = vrot.lane.b32.xlu1 %v222_v61, %s530_s13  ;;  %168 = vrot.lane.b32.xlu0 %v144_v3, %s529_s1 }
  0x88   :  { %v192_v6 = vpop.permute.xlu0 %191  ;;  %v194_v7 = vpop.permute.xlu1 %193 }
  0x89   :  { %v217_v8 = vsel %vm77_vm2, %v619_v10, %v192_v6  ;;  %v218_v9 = vsel %vm77_vm2, %v624_v11, %v194_v7 }
  0x8a   :  { %v223_v18 = vsel %vm84_vm3, %v217_v8, %v205_v2  ;;  %v224_v19 = vsel %vm84_vm3, %v218_v9, %v206_v4 }
  0x8b   :  { %173 = vrot.lane.b32.xlu1 %v145_v5, %s529_s1  ;;  %247 = vrot.lane.b32.xlu0 %v223_v18, %s530_s13 }
  0x8c   :  { %v48_v22 = vpop.permute.xlu0 %47  ;;  %v50_v23 = vpop.permute.xlu1 %49 }
  0x8d   :  { %v78_v10 = vsel %vm77_vm2, %v633_v13, %v48_v22  ;;  %v79_v11 = vsel %vm77_vm2, %v638_v14, %v50_v23 }
  0x8e   :  { %v85_v26 = vsel %vm84_vm3, %v78_v10, %v65_v12  ;;  %v86_v27 = vsel %vm84_vm3, %v79_v11, %v66_v15 }
  0x8f   :  { %252 = vrot.lane.b32.xlu1 %v224_v19, %s530_s13  ;;  %92 = vst.msk [vmem:[#allocation2] sm:$0x3f] %vm91_vm4, %v85_v26  ;;  %93 = vst.msk [vmem:[#allocation2 + $0x8] sm:$0x3f] %vm91_vm4, %v86_v27 }
  0x90   :  { %v54_v28 = vpop.permute.xlu0 %53  ;;  %v52_v29 = vpop.permute.xlu1 %51 }
  0x91   :  { %v81_v13 = vsel %vm77_vm2, %v647_v16, %v54_v28  ;;  %v80_v14 = vsel %vm77_vm2, %v652_v17, %v52_v29 }
  0x92   :  { %v88_v32 = vsel %vm84_vm3, %v81_v13, %v68_v24  ;;  %v87_v33 = vsel %vm84_vm3, %v80_v14, %v67_v25 }
  0x93   :  { %94 = vst.msk [vmem:[#allocation2 + $0x10] sm:$0x3f] %vm91_vm4, %v87_v33  ;;  %95 = vst.msk [vmem:[#allocation2 + $0x18] sm:$0x3f] %vm91_vm4, %v88_v32 }
  0x94   :  { %v58_v34 = vpop.permute.xlu0 %57  ;;  %v56_v35 = vpop.permute.xlu1 %55 }
  0x95   :  { %v83_v16 = vsel %vm77_vm2, %v667_v20, %v58_v34  ;;  %v82_v17 = vsel %vm77_vm2, %v672_v21, %v56_v35 }
  0x96   :  { %v90_v36 = vsel %vm84_vm3, %v83_v16, %v70_v30  ;;  %v89_v37 = vsel %vm84_vm3, %v82_v17, %v69_v31 }
  0x97   :  { %96 = vst.msk [vmem:[#allocation2 + $0x20] sm:$0x3f] %vm91_vm4, %v89_v37  ;;  %97 = vst.msk [vmem:[#allocation2 + $0x28] sm:$0x3f] %vm91_vm4, %v90_v36 }
  0xe9   :  { %v148_v38 = vpop.permute.xlu0 %147  ;;  %v227_v39 = vpop.permute.xlu1 %226 }
  0xea   :  { %151 = vst.msk [vmem:[#allocation2] sm:$0x3f] %vm150_vm5, %v148_v38 }
  0xeb   :  { %230 = vst.msk [vmem:[#allocation2] sm:$0x3f] %vm229_vm6, %v227_v39 }
  0xed   :  { %v154_v20 = vpop.permute.xlu0 %153  ;;  %v233_v40 = vpop.permute.xlu1 %232 }
  0xee   :  { %156 = vst.msk [vmem:[#allocation2 + $0x8] sm:$0x3f] %vm150_vm5, %v154_v20 }
  0xef   :  { %235 = vst.msk [vmem:[#allocation2 + $0x8] sm:$0x3f] %vm229_vm6, %v233_v40 }
  0xf1   :  { %v159_v21 = vpop.permute.xlu0 %158 }
  0xf2   :  { %161 = vst.msk [vmem:[#allocation2 + $0x10] sm:$0x3f] %vm150_vm5, %v159_v21  ;;  %v256_v41 = vld [vmem:[#allocation2] sm:$0xff] }
  0xf3   :  { %478 = vmatprep.mubr.msk.f32.mxu0 %vm34_vm0, %v256_v41 }
  0xf5   :  { %v238_v42 = vpop.permute.xlu1 %237  ;;  %v164_v43 = vpop.permute.xlu0 %163 }
  0xf6   :  { %240 = vst.msk [vmem:[#allocation2 + $0x10] sm:$0x3f] %vm229_vm6, %v238_v42  ;;  %v257_v44 = vld [vmem:[#allocation2 + $0x8] sm:$0xff] }
  0xf7   :  { %166 = vst.msk [vmem:[#allocation2 + $0x18] sm:$0x3f] %vm150_vm5, %v164_v43  ;;  %479 = vmatmul.mubr.msk.f32.vlgmr.msra.gmra.mrb[0].mxu0 %vm34_vm0, %v257_v44 }
  0xf9   :  { %v243_v45 = vpop.permute.xlu1 %242  ;;  %v169_v46 = vpop.permute.xlu0 %168 }
  0xfa   :  { %245 = vst.msk [vmem:[#allocation2 + $0x18] sm:$0x3f] %vm229_vm6, %v243_v45 }
  0xfb   :  { %171 = vst.msk [vmem:[#allocation2 + $0x20] sm:$0x3f] %vm150_vm5, %v169_v46 }
  0xfd   :  { %v174_v47 = vpop.permute.xlu1 %173  ;;  %v258_v48 = vld [vmem:[#allocation2 + $0x10] sm:$0xff]  ;;  %v248_v49 = vpop.permute.xlu0 %247 }
  0xfe   :  { %176 = vst.msk [vmem:[#allocation2 + $0x28] sm:$0x3f] %vm150_vm5, %v174_v47  ;;  %481 = vmatprep.mubr.msk.f32.mxu1 %vm34_vm0, %v258_v48 }
  0xff   :  { %250 = vst.msk [vmem:[#allocation2 + $0x20] sm:$0x3f] %vm229_vm6, %v248_v49 }
 0x101   :  { %v253_v50 = vpop.permute.xlu1 %252  ;;  %v259_v51 = vld [vmem:[#allocation2 + $0x18] sm:$0xff] }
 0x102   :  { %255 = vst.msk [vmem:[#allocation2 + $0x28] sm:$0x3f] %vm229_vm6, %v253_v50  ;;  %482 = vmatmul.mubr.msk.f32.vlgmr.msra.gmra.mrb[0].mxu1 %vm34_vm0, %v259_v51 }
 0x106   :  { %v260_v52 = vld [vmem:[#allocation2 + $0x20] sm:$0xff] }
 0x107   :  { %484 = vmatprep.mubr.msk.f32.mxu1 %vm34_vm0, %v260_v52 }
 0x109   :  { %v261_v53 = vld [vmem:[#allocation2 + $0x28] sm:$0xff] }
 0x10a   :  { %485 = vmatmul.mubr.msk.f32.gmra.mrb[2].mxu1 %vm34_vm0, %v261_v53 }
 0x1ca   :  { %v480_v54 = vpop.f32.mrb[0].mxu0 }
 0x1cb   :  { %v380_v55 = vsub.f32 0.0, %v480_v54  ;;  %v350_v56 = vpop.f32.mrb[1].mxu0 }
 0x1cc   :  { %v379_v57 = vsub.f32 0.0, %v350_v56 }
 0x1cd   :  { %v387_v58 = vmul.f32 1.442695, %v380_v55 }
 0x1ce   :  { %v385_v59 = vmul.f32 1.442695, %v379_v57 }
 0x1cf   :  { %503 = vpow2.f32 %v387_v58 }
 0x1d0   :  { %505 = vpow2.f32 %v385_v59 }
 0x1d5   :  { %v483_v60 = vpop.f32.mrb[0].mxu1 }
 0x1d6   :  { %v382_v61 = vsub.f32 0.0, %v483_v60  ;;  %v360_v62 = vpop.f32.mrb[1].mxu1 }
 0x1d7   :  { %v381_v63 = vsub.f32 0.0, %v360_v62 }
 0x1d8   :  { %v391_v0 = vmul.f32 1.442695, %v382_v61 }
 0x1d9   :  { %v504_v1 = vpop.eup %503  ;;  %v389_v2 = vmul.f32 1.442695, %v381_v63 }
 0x1da   :  { %v506_v3 = vpop.eup %505  ;;  %507 = vpow2.f32 %v391_v0  ;;  %v398_v5 = vadd.f32 1.0, %v504_v1 }
 0x1db   :  { %v397_v4 = vadd.f32 1.0, %v506_v3  ;;  %509 = vpow2.f32 %v389_v2 }
 0x1dd   :  { %511 = vrcp.f32 %v397_v4  ;;  %v486_v6 = vpop.f32.mrb[2].mxu1 }
 0x1de   :  { %v384_v7 = vsub.f32 0.0, %v486_v6  ;;  %v370_v8 = vpop.f32.mrb[3].mxu1  ;;  %513 = vrcp.f32 %v398_v5 }
 0x1df   :  { %v383_v9 = vsub.f32 0.0, %v370_v8 }
 0x1e0   :  { %v395_v12 = vmul.f32 1.442695, %v384_v7 }
 0x1e1   :  { %v393_v15 = vmul.f32 1.442695, %v383_v9 }
 0x1e2   :  { %515 = vpow2.f32 %v395_v12 }
 0x1e3   :  { %517 = vpow2.f32 %v393_v15 }
 0x1e4   :  { %v508_v18 = vpop.eup %507 }
 0x1e5   :  { %v510_v19 = vpop.eup %509  ;;  %v400_v10 = vadd.f32 1.0, %v508_v18 }
 0x1e6   :  { %v399_v22 = vadd.f32 1.0, %v510_v19 }
 0x1e7   :  { %v512_v23 = vpop.eup %511 }
 0x1e8   :  { %519 = vrcp.f32 %v399_v22  ;;  %415 = vxpose.xlu0.b32.start [1/6] (short) (narrow) %v512_v23, 8  ;;  %v514_v11 = vpop.eup %513 }
 0x1e9   :  { %521 = vrcp.f32 %v400_v10 }
 0x1ec   :  { %v516_v24 = vpop.eup %515  ;;  %416 = vxpose.xlu0.b32.cont [2/6] (short) (narrow) %v514_v11, 8 }
 0x1ed   :  { %v518_v25 = vpop.eup %517  ;;  %v402_v27 = vadd.f32 1.0, %v516_v24 }
 0x1ee   :  { %v401_v26 = vadd.f32 1.0, %v518_v25 }
 0x1f0   :  { %523 = vrcp.f32 %v401_v26 }
 0x1f1   :  { %525 = vrcp.f32 %v402_v27 }
 0x1f2   :  { %v520_v28 = vpop.eup %519 }
 0x1f3   :  { %417 = vxpose.xlu0.b32.cont [3/6] (short) (narrow) %v520_v28, 8  ;;  %v522_v29 = vpop.eup %521 }
 0x1f7   :  { %418 = vxpose.xlu0.b32.cont [4/6] (short) (narrow) %v522_v29, 8 }
 0x1fa   :  { %v524_v13 = vpop.eup %523 }
 0x1fb   :  { %419 = vxpose.xlu0.b32.cont [5/6] (short) (narrow) %v524_v13, 8  ;;  %v526_v14 = vpop.eup %525 }
 0x1ff   :  { %420 = vxpose.xlu0.b32.end [6/6] (short) (narrow) %v526_v14, 8 }
 0x26b   :  { %v431_v30 = vpop.trf.xlu0 }
 0x26c   :  { %448 = vst.msk [vmem:[%s803_s2] sm:$0xff] %vm447_vm7, %v431_v30 }

</bundles_post_ra>
